<compile_context>
chip_gen: v7x
topology: tpu7x:2x2x1
jax: 0.10.0
libtpu: 0.0.40
codegen_flags: <defaults>
</compile_context>

<pallas_src>
import jax
import jax.numpy as jnp
from jax import lax
from jax.experimental import pallas as pl
from jax.experimental.pallas import tpu as pltpu

LN_EPS = 1e-5

_VMEM_BUDGET = 40 * 1024 * 1024   # sizing budget: fits v7x 64 MiB physical with headroom
_VMEM_LIMIT = 48 * 1024 * 1024    # scoped VMEM limit handed to the compiler


def _patch_embed_kernel(x_ref, w_ref, b_ref, g2_ref, posb_ref, cls_ref, o_ref):
    # x_ref:    (TB, N, P)  bf16  patchified pixels for TB images
    # w_ref:    (P, E)      bf16  LN1-affine-folded linear weight
    # b_ref:    (1, E)      f32   LN1-affine-folded linear bias
    # g2_ref:   (1, E)      f32   LN2 gamma
    # posb_ref: (N, E)      f32   pos_embed[1:] + LN2 beta
    # cls_ref:  (1, E)      f32   cls_token + pos_embed[0]
    # o_ref:    (TB, N+1, E) bf16 final tokens (cls at token 0)
    tb, n, p = x_ref.shape
    e = w_ref.shape[1]

    # Flatten every patch row of this tile into one tall slab -> single MXU pass.
    x = x_ref[...].astype(jnp.float32).reshape(tb * n, p)

    # LayerNorm over patch_dim (affine folded into W'/b'), two-pass stats in f32.
    mu = jnp.mean(x, axis=-1, keepdims=True)
    xc = x - mu
    var = jnp.mean(xc * xc, axis=-1, keepdims=True)
    xn = xc * lax.rsqrt(var + LN_EPS)

    # One (TB*N, P) x (P, E) matmul: bf16 operands, f32 accumulation.
    y = jnp.dot(xn.astype(jnp.bfloat16), w_ref[...],
                preferred_element_type=jnp.float32) + b_ref[...]

    # LayerNorm over emb_dim; beta + positional embedding pre-folded into posb.
    mu2 = jnp.mean(y, axis=-1, keepdims=True)
    yc = y - mu2
    var2 = jnp.mean(yc * yc, axis=-1, keepdims=True)
    yn = yc * lax.rsqrt(var2 + LN_EPS)

    patches = (yn * g2_ref[...]).reshape(tb, n, e) + posb_ref[...]     # (TB, N, E)
    cls_rows = jnp.broadcast_to(cls_ref[...][None], (tb, 1, e))        # (TB, 1, E)

    # One aligned full-block store (no masked per-image / offset-1 stores).
    # TODO(synk): for toy configs with E < 128 the lane dim is mostly padding; a
    # lane-packing of multiple images would be needed for full vreg utilization.
    o_ref[...] = jnp.concatenate([cls_rows, patches], axis=1).astype(o_ref.dtype)


def _pick_batch_tile(batch, n, p, e, in_bytes, out_bytes):
    """Images per grid step, sized from an explicit VMEM byte budget."""
    # Residents (counted x2 to stay safe even if single-buffering is ignored).
    resident = 2 * (p * e * 2 + n * e * 4 + 3 * e * 4)
    # Pipelined operands are double-buffered: input patches + output tokens.
    per_image = 2 * (n * p * in_bytes) + 2 * ((n + 1) * e * out_bytes)
    avail = max(_VMEM_BUDGET - resident, per_image)
    tb = max(1, int(avail // per_image))
    # Keep ~<=4096 patch rows per grid step (pipelining granularity).
    tb = min(tb, max(1, 4096 // max(n, 1)))
    if batch >= 2:
        # Keep grid length >= 2 so dimension_semantics=("parallel",) can shard
        # the grid across v7x's two TensorCores.
        tb = min(tb, batch // 2)
    return max(1, min(tb, batch))


def patch_embed_pallas(x_patches, ln1_g, ln1_b, w, b, ln2_g, ln2_b, pos, cls_token,
                       out_dtype=jnp.bfloat16):
    """x_patches: (B, N, P) bf16 -> tokens (B, N+1, E) with cls prepended, pos added."""
    B, N, P = x_patches.shape
    E = w.shape[1]

    # Fold LN1 affine into the linear layer (exact algebra, done once in f32).
    w_f = (ln1_g[:, None] * w).astype(jnp.bfloat16)                    # (P, E)
    b_f = (ln1_b @ w + b).reshape(1, E).astype(jnp.float32)            # (1, E)
    # Fold LN2 beta + patch positional embedding; precompute the cls row.
    posb = (pos[1:] + ln2_b[None, :]).astype(jnp.float32)              # (N, E)
    cls_row = (cls_token + pos[0]).reshape(1, E).astype(jnp.float32)   # (1, E)
    g2 = ln2_g.reshape(1, E).astype(jnp.float32)

    in_bytes = jnp.dtype(x_patches.dtype).itemsize
    out_bytes = jnp.dtype(out_dtype).itemsize
    TB = _pick_batch_tile(B, N, P, E, in_bytes, out_bytes)

    # Handle batches with no good divisor: pad up to a multiple of TB (zero rows
    # are numerically safe through both LayerNorms) and slice the result back.
    B_pad = -(-B // TB) * TB
    if B_pad != B:
        x_patches = jnp.pad(x_patches, ((0, B_pad - B), (0, 0), (0, 0)))
    grid = (B_pad // TB,)

    resident_2d = lambda i: (0, 0)
    grid_spec = pltpu.PrefetchScalarGridSpec(
        num_scalar_prefetch=0,
        grid=grid,
        in_specs=[
            pl.BlockSpec((TB, N, P), lambda i: (i, 0, 0)),             # patch tile
            pl.BlockSpec((P, E), resident_2d, pipeline_mode=pl.Buffered(1)),
            pl.BlockSpec((1, E), resident_2d, pipeline_mode=pl.Buffered(1)),
            pl.BlockSpec((1, E), resident_2d, pipeline_mode=pl.Buffered(1)),
            pl.BlockSpec((N, E), resident_2d, pipeline_mode=pl.Buffered(1)),
            pl.BlockSpec((1, E), resident_2d, pipeline_mode=pl.Buffered(1)),
        ],
        out_specs=pl.BlockSpec((TB, N + 1, E), lambda i: (i, 0, 0)),
    )

    out = pl.pallas_call(
        _patch_embed_kernel,
        out_shape=jax.ShapeDtypeStruct((B_pad, N + 1, E), out_dtype),
        grid_spec=grid_spec,
        compiler_params=pltpu.CompilerParams(
            dimension_semantics=("parallel",),
            vmem_limit_bytes=_VMEM_LIMIT),
    )(x_patches, w_f, b_f, g2, posb, cls_row)

    return out[:B] if B_pad != B else out


def patchify(x, ph, pw, dtype=jnp.bfloat16):
    """einops: 'b c (nh ph) (nw pw) -> b (nh nw) (ph pw c)', emitted in bf16."""
    B, C, H, W = x.shape
    nh, nw = H // ph, W // pw
    out = x.reshape(B, C, nh, ph, nw, pw)
    out = jnp.transpose(out, (0, 2, 4, 3, 5, 1))   # (B, nh, nw, ph, pw, C)
    return out.reshape(B, nh * nw, ph * pw * C).astype(dtype)


def patch_embedding_forward(x, params, ph, pw):
    """Full forward matching the PyTorch module (dropout in eval mode)."""
    # TODO(synk): the patchify transpose is still one host-side HBM pass (now bf16,
    # half the bytes); fully fusing the patch gather into the kernel would need an
    # NHWC input layout plus a per-patch index_map / manual DMA and is not done here.
    patches = patchify(x, ph, pw)                                   # (B, N, P) bf16
    out = patch_embed_pallas(
        patches, params["ln1_g"], params["ln1_b"], params["w"], params["b"],
        params["ln2_g"], params["ln2_b"], params["pos_embed"][0],
        params["cls_token"])                                        # (B, N+1, E) bf16
    # TODO(synk): nn.Dropout is identity in eval mode; training-time dropout not applied.
    return out


def reference_forward(x, params, ph, pw):
    """Plain-JAX f32 reference matching the PyTorch module math."""
    patches = patchify(x, ph, pw, dtype=jnp.float32)
    mu = jnp.mean(patches, -1, keepdims=True)
    var = jnp.mean((patches - mu) ** 2, -1, keepdims=True)
    xn = (patches - mu) / jnp.sqrt(var + LN_EPS) * params["ln1_g"] + params["ln1_b"]
    y = xn @ params["w"] + params["b"]
    mu2 = jnp.mean(y, -1, keepdims=True)
    var2 = jnp.mean((y - mu2) ** 2, -1, keepdims=True)
    yn = (y - mu2) / jnp.sqrt(var2 + LN_EPS) * params["ln2_g"] + params["ln2_b"]
    B = x.shape[0]
    cls = jnp.broadcast_to(params["cls_token"][None, None, :], (B, 1, yn.shape[-1]))
    return jnp.concatenate([cls, yn], axis=1) + params["pos_embed"]


if __name__ == "__main__":
    # config: image 16x16, 4 channels, patch 4x4, emb_dim 32
    B, C, H, W = 2, 4, 16, 16
    ph, pw = 4, 4
    E = 32
    N = (H // ph) * (W // pw)          # 16 patches
    P = C * ph * pw                    # patch_dim = 64

    key = jax.random.PRNGKey(0)
    kx, kw, kb, kcls, kpos, kg1, kb1, kg2, kb2 = jax.random.split(key, 9)

    x = jax.random.normal(kx, (B, C, H, W), dtype=jnp.float32)

    params = {
        "ln1_g": 1.0 + 0.1 * jax.random.normal(kg1, (P,), dtype=jnp.float32),
        "ln1_b": 0.1 * jax.random.normal(kb1, (P,), dtype=jnp.float32),
        "w": jax.random.normal(kw, (P, E), dtype=jnp.float32) * 0.02,
        "b": jax.random.normal(kb, (E,), dtype=jnp.float32) * 0.02,
        "ln2_g": 1.0 + 0.1 * jax.random.normal(kg2, (E,), dtype=jnp.float32),
        "ln2_b": 0.1 * jax.random.normal(kb2, (E,), dtype=jnp.float32),
        # learnable parameters (zeros at init in torch); random here to exercise the folds
        "pos_embed": 0.1 * jax.random.normal(kpos, (1, N + 1, E), dtype=jnp.float32),
        "cls_token": jax.random.normal(kcls, (E,), dtype=jnp.float32),
    }

    fwd = jax.jit(lambda xx: patch_embedding_forward(xx, params, ph, pw))
    out = jax.block_until_ready(fwd(x))

    ref = reference_forward(x, params, ph, pw)
    assert out.shape == (B, N + 1, E), out.shape
    # bf16 input / matmul operands / output -> compare against all-f32 reference
    # with a correspondingly loose tolerance.
    out_f32 = out.astype(jnp.float32)
    err = float(jnp.max(jnp.abs(out_f32 - ref)))
    assert jnp.allclose(out_f32, ref, atol=2.5e-2, rtol=2.5e-2), err

    print("KERNEL_OK")
</pallas_src>

<mosaic_0001>
module attributes {stable_mosaic.version = 11 : i64} {
  func.func @_patch_embed_kernel(%arg0: i32, %arg1: memref<1x16x64xbf16, #tpu.memory_space<vmem>>, %arg2: memref<64x32xbf16, #tpu.memory_space<vmem>>, %arg3: memref<1x32xf32, #tpu.memory_space<vmem>>, %arg4: memref<1x32xf32, #tpu.memory_space<vmem>>, %arg5: memref<16x32xf32, #tpu.memory_space<vmem>>, %arg6: memref<1x32xf32, #tpu.memory_space<vmem>>, %arg7: memref<1x17x32xbf16, #tpu.memory_space<vmem>>) attributes {dimension_semantics = [#tpu.dimension_semantics<parallel>], iteration_bounds = array<i64: 2>, scalar_prefetch = 0 : i64, scratch_operands = 0 : i64, tpu.core_type = #tpu.core_type<tc>, window_params = [{transform_indices = @transform_0, window_bounds = array<i64: 1, 16, 64>}, {pipeline_mode = #tpu.pipeline_mode<synchronous>, transform_indices = @transform_1, window_bounds = array<i64: 64, 32>}, {pipeline_mode = #tpu.pipeline_mode<synchronous>, transform_indices = @transform_2, window_bounds = array<i64: 1, 32>}, {pipeline_mode = #tpu.pipeline_mode<synchronous>, transform_indices = @transform_3, window_bounds = array<i64: 1, 32>}, {pipeline_mode = #tpu.pipeline_mode<synchronous>, transform_indices = @transform_4, window_bounds = array<i64: 16, 32>}, {pipeline_mode = #tpu.pipeline_mode<synchronous>, transform_indices = @transform_5, window_bounds = array<i64: 1, 32>}, {transform_indices = @transform_6, window_bounds = array<i64: 1, 17, 32>}]} {
    %c0 = arith.constant 0 : index
    %c0_0 = arith.constant 0 : index
    %c0_1 = arith.constant 0 : index
    %0 = vector.load %arg1[%c0, %c0_0, %c0_1] : memref<1x16x64xbf16, #tpu.memory_space<vmem>>, vector<1x16x64xbf16>
    %1 = arith.extf %0 : vector<1x16x64xbf16> to vector<1x16x64xf32>
    %2 = vector.shape_cast %1 : vector<1x16x64xf32> to vector<16x64xf32>
    %cst = arith.constant dense<0.000000e+00> : vector<16xf32>
    %3 = vector.multi_reduction <add>, %2, %cst [1] : vector<16x64xf32> to vector<16xf32>
    %4 = vector.shape_cast %3 : vector<16xf32> to vector<16x1xf32>
    %cst_2 = arith.constant 6.400000e+01 : f32
    %5 = vector.broadcast %cst_2 : f32 to vector<16x1xf32>
    %6 = arith.divf %4, %5 : vector<16x1xf32>
    %7 = vector.broadcast %6 : vector<16x1xf32> to vector<16x64xf32>
    %8 = arith.subf %2, %7 : vector<16x64xf32>
    %9 = arith.mulf %8, %8 : vector<16x64xf32>
    %cst_3 = arith.constant dense<0.000000e+00> : vector<16xf32>
    %10 = vector.multi_reduction <add>, %9, %cst_3 [1] : vector<16x64xf32> to vector<16xf32>
    %11 = vector.shape_cast %10 : vector<16xf32> to vector<16x1xf32>
    %cst_4 = arith.constant 6.400000e+01 : f32
    %12 = vector.broadcast %cst_4 : f32 to vector<16x1xf32>
    %13 = arith.divf %11, %12 : vector<16x1xf32>
    %cst_5 = arith.constant 9.99999974E-6 : f32
    %14 = vector.broadcast %cst_5 : f32 to vector<16x1xf32>
    %15 = arith.addf %13, %14 : vector<16x1xf32>
    %16 = math.rsqrt %15 : vector<16x1xf32>
    %17 = vector.broadcast %16 : vector<16x1xf32> to vector<16x64xf32>
    %18 = arith.mulf %8, %17 : vector<16x64xf32>
    %19 = arith.truncf %18 : vector<16x64xf32> to vector<16x64xbf16>
    %c0_6 = arith.constant 0 : index
    %c0_7 = arith.constant 0 : index
    %20 = vector.load %arg2[%c0_6, %c0_7] : memref<64x32xbf16, #tpu.memory_space<vmem>>, vector<64x32xbf16>
    %cst_8 = arith.constant dense<0.000000e+00> : vector<16x32xf32>
    %21 = tpu.matmul %19, %20, %cst_8 {dimension_numbers = #tpu.dot_dimension_numbers<[1], [0], [0], [1], [0, 0, 1, 1], [], []>} : vector<16x64xbf16>, vector<64x32xbf16>, vector<16x32xf32> -> vector<16x32xf32>
    %c0_9 = arith.constant 0 : index
    %c0_10 = arith.constant 0 : index
    %22 = vector.load %arg3[%c0_9, %c0_10] : memref<1x32xf32, #tpu.memory_space<vmem>>, vector<1x32xf32>
    %23 = vector.broadcast %22 : vector<1x32xf32> to vector<16x32xf32>
    %24 = arith.addf %21, %23 : vector<16x32xf32>
    %cst_11 = arith.constant dense<0.000000e+00> : vector<16xf32>
    %25 = vector.multi_reduction <add>, %24, %cst_11 [1] : vector<16x32xf32> to vector<16xf32>
    %26 = vector.shape_cast %25 : vector<16xf32> to vector<16x1xf32>
    %cst_12 = arith.constant 3.200000e+01 : f32
    %27 = vector.broadcast %cst_12 : f32 to vector<16x1xf32>
    %28 = arith.divf %26, %27 : vector<16x1xf32>
    %29 = vector.broadcast %28 : vector<16x1xf32> to vector<16x32xf32>
    %30 = arith.subf %24, %29 : vector<16x32xf32>
    %31 = arith.mulf %30, %30 : vector<16x32xf32>
    %cst_13 = arith.constant dense<0.000000e+00> : vector<16xf32>
    %32 = vector.multi_reduction <add>, %31, %cst_13 [1] : vector<16x32xf32> to vector<16xf32>
    %33 = vector.shape_cast %32 : vector<16xf32> to vector<16x1xf32>
    %cst_14 = arith.constant 3.200000e+01 : f32
    %34 = vector.broadcast %cst_14 : f32 to vector<16x1xf32>
    %35 = arith.divf %33, %34 : vector<16x1xf32>
    %cst_15 = arith.constant 9.99999974E-6 : f32
    %36 = vector.broadcast %cst_15 : f32 to vector<16x1xf32>
    %37 = arith.addf %35, %36 : vector<16x1xf32>
    %38 = math.rsqrt %37 : vector<16x1xf32>
    %39 = vector.broadcast %38 : vector<16x1xf32> to vector<16x32xf32>
    %40 = arith.mulf %30, %39 : vector<16x32xf32>
    %c0_16 = arith.constant 0 : index
    %c0_17 = arith.constant 0 : index
    %41 = vector.load %arg4[%c0_16, %c0_17] : memref<1x32xf32, #tpu.memory_space<vmem>>, vector<1x32xf32>
    %42 = vector.broadcast %41 : vector<1x32xf32> to vector<16x32xf32>
    %43 = arith.mulf %40, %42 : vector<16x32xf32>
    %44 = vector.shape_cast %43 : vector<16x32xf32> to vector<1x16x32xf32>
    %c0_18 = arith.constant 0 : index
    %c0_19 = arith.constant 0 : index
    %45 = vector.load %arg5[%c0_18, %c0_19] : memref<16x32xf32, #tpu.memory_space<vmem>>, vector<16x32xf32>
    %46 = vector.shape_cast %45 : vector<16x32xf32> to vector<1x16x32xf32>
    %47 = arith.addf %44, %46 : vector<1x16x32xf32>
    %c0_20 = arith.constant 0 : index
    %c0_21 = arith.constant 0 : index
    %48 = vector.load %arg6[%c0_20, %c0_21] : memref<1x32xf32, #tpu.memory_space<vmem>>, vector<1x32xf32>
    %49 = vector.shape_cast %48 : vector<1x32xf32> to vector<1x1x32xf32>
    %50 = tpu.concatenate %49, %47 in 1 : vector<1x1x32xf32>, vector<1x16x32xf32> -> vector<1x17x32xf32>
    %51 = arith.truncf %50 : vector<1x17x32xf32> to vector<1x17x32xbf16>
    %c0_22 = arith.constant 0 : index
    %c0_23 = arith.constant 0 : index
    %c0_24 = arith.constant 0 : index
    %52 = vector.load %arg7[%c0_22, %c0_23, %c0_24] : memref<1x17x32xbf16, #tpu.memory_space<vmem>>, vector<1x17x32xbf16>
    tpu.vector_store %arg7[%c0_22, %c0_23, %c0_24], %51 {strides = array<i32>} : memref<1x17x32xbf16, #tpu.memory_space<vmem>>, vector<1x17x32xbf16>,
    return
  }
  func.func @transform_0(%arg0: i32) -> (i32, i32, i32) {
    %c0_i32 = arith.constant 0 : i32
    %c0_i32_0 = arith.constant 0 : i32
    %c0_i32_1 = arith.constant 0 : i32
    return %arg0, %c0_i32, %c0_i32_0 : i32, i32, i32
  }
  func.func @transform_1(%arg0: i32) -> (i32, i32) {
    %c0_i32 = arith.constant 0 : i32
    %c0_i32_0 = arith.constant 0 : i32
    %c0_i32_1 = arith.constant 0 : i32
    return %c0_i32, %c0_i32_0 : i32, i32
  }
  func.func @transform_2(%arg0: i32) -> (i32, i32) {
    %c0_i32 = arith.constant 0 : i32
    %c0_i32_0 = arith.constant 0 : i32
    %c0_i32_1 = arith.constant 0 : i32
    return %c0_i32, %c0_i32_0 : i32, i32
  }
  func.func @transform_3(%arg0: i32) -> (i32, i32) {
    %c0_i32 = arith.constant 0 : i32
    %c0_i32_0 = arith.constant 0 : i32
    %c0_i32_1 = arith.constant 0 : i32
    return %c0_i32, %c0_i32_0 : i32, i32
  }
  func.func @transform_4(%arg0: i32) -> (i32, i32) {
    %c0_i32 = arith.constant 0 : i32
    %c0_i32_0 = arith.constant 0 : i32
    %c0_i32_1 = arith.constant 0 : i32
    return %c0_i32, %c0_i32_0 : i32, i32
  }
  func.func @transform_5(%arg0: i32) -> (i32, i32) {
    %c0_i32 = arith.constant 0 : i32
    %c0_i32_0 = arith.constant 0 : i32
    %c0_i32_1 = arith.constant 0 : i32
    return %c0_i32, %c0_i32_0 : i32, i32
  }
  func.func @transform_6(%arg0: i32) -> (i32, i32, i32) {
    %c0_i32 = arith.constant 0 : i32
    %c0_i32_0 = arith.constant 0 : i32
    %c0_i32_1 = arith.constant 0 : i32
    return %arg0, %c0_i32, %c0_i32_0 : i32, i32, i32
  }
}

</mosaic_0001>

<bundles_post_ra>
// kernel: _lambda_.1
= control target key start
LH: loop header
LB: loop body
LE: loop exit
PB: predicated region body
PF: predicated region fallthrough
CT: control target
= control target key end

     0   :  { %s611_s21 = smov 0   ;;  %s668_s0 = inlined_call_operand.vmem [shape: bf16[2,16,64], index: 0, kind: input, shape index: {}]   ;;  %s669_s1 = inlined_call_operand.vmem [shape: bf16[64,32], index: 1, kind: input, shape index: {}]   ;;  %s670_s2 = inlined_call_operand.vmem [shape: f32[1,32], index: 2, kind: input, shape index: {}]   ;;  %s671_s3 = inlined_call_operand.vmem [shape: f32[1,32], index: 3, kind: input, shape index: {}]   ;;  %s672_s4 = inlined_call_operand.vmem [shape: f32[16,32], index: 4, kind: input, shape index: {}]   ;;  %s673_s5 = inlined_call_operand.vmem [shape: f32[1,32], index: 5, kind: input, shape index: {}]   ;;  %s674_s6 = inlined_call_operand.vmem [shape: bf16[2,17,32], index: 6, kind: output, shape index: {}]  }
   0x1 LB: > { %s498_s22 = sadd.s32 4294967295, %s572_s21   ;;  %p502_p0 = scmp.ge.s32.totalorder %s572_s21, 1  ;;  %s572_s21 = sphi %s611_s21, %s16_s21  }
   0x2   : > { %p212_p1 = scmp.lt.s32.totalorder %s572_s21, 3 }
   0x4   : > { %p213_p2 = pnand %p502_p0, %p212_p1 }
   0x5   : > { %p242_p3 = scmp.lt.s32.totalorder (!%p213_p2), %s498_s22, 1  ;;  %vm257_vm0 = vcmask (!%p213_p2), 523264   ;;  %v554_v15 = vld [vmem:[%s669_s1] sm:$0xff] (!%p213_p2)   ;;  %v574_v16 = vmov (!%p213_p2), 0.0   ;;  %v555_v17 = vld [vmem:[%s669_s1 + $0x8] sm:$0xff] (!%p213_p2)   ;;  %vm575_vm1 = vmmov (!%p213_p2), 0  }
   0x6   : > { %216 = sbr.rel (%p213_p2) target bundleno = 869 (0x365), region = 44  ;;  %531 = vmatprep.subr.bf16.mxu0 (!%p213_p2), %v574_v16  ;;  %539 = vmatprep.mubr.msk.bf16.mxu0 (!%p213_p2), %vm575_vm1, %v574_v16  ;;  %v556_v18 = vld [vmem:[%s669_s1 + $0x10] sm:$0xff] (!%p213_p2)   ;;  %v557_v19 = vld [vmem:[%s669_s1 + $0x18] sm:$0xff] (!%p213_p2)   ;;  %v506_v31 = vld [vmem:[%s670_s2] ss:$0 sm:$0xff] (!%p213_p2)  ;;  %vm369_vm2 = vcmask (!%p213_p2), 261120  }
   0x7   : > { %532 = vmatpush3.bf16.msra.mxu0 (!%p213_p2), %v554_v15  ;;  %v512_v57 = vld [vmem:[%s671_s3] ss:$0 sm:$0xff] (!%p213_p2)  ;;  %v407_v63 = vld [vmem:[%s672_s4 + $0x8] sm:$0xff] (!%p213_p2)  ;;  %vm413_vm3 = vcmask (!%p213_p2), 1040384   ;;  %vm437_vm4 = vcmask (!%p213_p2), 253952   ;;  %vm434_vm6 = vcmask (!%p213_p2), 257024  }
   0x8   : > { %533 = vmatprep.subr.bf16.mxu0 (!%p213_p2), %v574_v16  ;;  %v406_v60 = vld [vmem:[%s672_s4] sm:$0xff] (!%p213_p2)  ;;  %vm438_vm5 = vsmask.f32 (!%p213_p2), 256 }
   0x9   : > { %vm439_vm7 = vmand (!%p213_p2), %vm437_vm4, %vm438_vm5 }
   0xb   : > { %534 = vmatpush3.bf16.msra.mxu0 (!%p213_p2), %v555_v17 }
   0xc   : > { %535 = vmatprep.subr.bf16.mxu0 (!%p213_p2), %v574_v16 }
   0xd   : > { %s676_s22 = smov (!%p242_p3, %s498_s22), 1 }
   0xe   : > { %s518_s23 = sshll.u32 %s676_s22, 3  ;;  %s543_s17 = smul.u32 12, %s676_s22 }
   0xf   : > { %s246_s26 = scalar_lea.vmem %s668_s0, %s518_s23  ;;  %536 = vmatpush3.bf16.msra.mxu0 %v556_v18 }
  0x10   : > { %v523_v0 = vld [vmem:[%s246_s26] sm:$0xff]   ;;  %537 = vmatprep.subr.bf16.mxu0 %v574_v16  ;;  %s251_s26 = scalar_lea.vmem %s674_s6, %s543_s17 }
  0x11   : > { %v524_v1 = vunpack.c.l.bf16 %v523_v0  ;;  %v525_v2 = vunpack.c.h.bf16 %v523_v0 }
  0x13   : > { %v258_v3 = vsel %vm257_vm0, %v524_v1, 0.0  ;;  %v261_v4 = vsel %vm257_vm0, %v525_v2, 0.0  ;;  %538 = vmatpush3.bf16.msra.mxu0 %v557_v19 }
  0x14   : > { %259 = vadd.xlane.f32.xlu0 %v258_v3 }
  0x18   : > { %262 = vadd.xlane.f32.xlu0 %v261_v4 }
  0xa1   : > { %v260_v5 = vpop.xlane.xlu0 %259 }
  0xa2   : > { %v265_v6 = vmul.f32 0.015625, %v260_v5 }
  0xa4   : > { %v267_v7 = vsub.f32 %v524_v1, %v265_v6 }
  0xa5   : > { %v263_v8 = vpop.xlane.xlu0 %262 }
  0xa6   : > { %v266_v9 = vmul.f32 0.015625, %v263_v8  ;;  %v269_v10 = vmul.f32 %v267_v7, %v267_v7 }
  0xa8   : > { %v268_v11 = vsub.f32 %v525_v2, %v266_v9  ;;  %v271_v12 = vsel %vm257_vm0, %v269_v10, 0.0  ;;  %v410_v2 = vld [vmem:[%s673_s5] sm:$0x1] }
  0xa9   : > { %272 = vadd.xlane.f32.xlu1 %v271_v12 }
  0xaa   : > { %v270_v13 = vmul.f32 %v268_v11, %v268_v11 }
  0xac   : > { %v274_v14 = vsel %vm257_vm0, %v270_v13, 0.0 }
  0xad   : > { %275 = vadd.xlane.f32.xlu1 %v274_v14 }
 0x136   : > { %v273_v20 = vpop.xlane.xlu1 %272 }
 0x137   : > { %v277_v21 = vmul.f32 0.015625, %v273_v20 }
 0x139   : > { %v279_v22 = vadd.f32 1e-05, %v277_v21 }
 0x13a   : > { %v276_v23 = vpop.xlane.xlu1 %275 }
 0x13b   : > { %v278_v24 = vmul.f32 0.015625, %v276_v23  ;;  %558 = vrsqrt.f32 %v279_v22 }
 0x13d   : > { %v280_v25 = vadd.f32 1e-05, %v278_v24 }
 0x13f   : > { %560 = vrsqrt.f32 %v280_v25 }
 0x145   : > { %v559_v26 = vpop.eup %558 }
 0x146   : > { %v283_v28 = vmul.f32 %v559_v26, %v267_v7  ;;  %v440_v7 = vld [vmem:[%s251_s26 + $0x8] sm:$0x1] }
 0x149   : > { %v561_v27 = vpop.eup %560 }
 0x14a   : > { %v284_v29 = vmul.f32 %v561_v27, %v268_v11 }
 0x14c   : > { %v285_v30 = vpack.c.bf16 %v284_v29, %v283_v28 }
 0x14e   : > { %540 = vmatmul.mubr.msk.bf16.vlgmr.msra.gmra.mrb[0].mxu0 %vm257_vm0, %v285_v30 }
 0x221   : > { %v362_v32 = vpop.f32.mrb[0].mxu0 }
 0x222   : > { %v363_v33 = vadd.f32 %v506_v31, %v362_v32  ;;  %v541_v34 = vpop.f32.mrb[1].mxu0 }
 0x223   : > { %v365_v35 = vpop.f32.mrb[2].mxu0 }
 0x224   : > { %v366_v36 = vadd.f32 %v506_v31, %v365_v35  ;;  %v542_v37 = vpop.f32.mrb[3].mxu0  ;;  %v370_v38 = vsel %vm369_vm2, %v363_v33, 0.0 }
 0x225   : > { %371 = vadd.xlane.f32.xlu0 %v370_v38 }
 0x226   : > { %v373_v39 = vsel %vm369_vm2, %v366_v36, 0.0 }
 0x227   : > { %374 = vadd.xlane.f32.xlu1 %v373_v39 }
 0x2b2   : > { %v372_v40 = vpop.xlane.xlu0 %371 }
 0x2b3   : > { %v377_v41 = vmul.f32 0.03125, %v372_v40 }
 0x2b4   : > { %v375_v42 = vpop.xlane.xlu1 %374 }
 0x2b5   : > { %v379_v43 = vsub.f32 %v363_v33, %v377_v41  ;;  %v378_v44 = vmul.f32 0.03125, %v375_v42 }
 0x2b7   : > { %v380_v45 = vsub.f32 %v366_v36, %v378_v44  ;;  %v381_v46 = vmul.f32 %v379_v43, %v379_v43 }
 0x2b9   : > { %v383_v47 = vsel %vm369_vm2, %v381_v46, 0.0  ;;  %v382_v48 = vmul.f32 %v380_v45, %v380_v45 }
 0x2ba   : > { %384 = vadd.xlane.f32.xlu0 %v383_v47 }
 0x2bb   : > { %v386_v49 = vsel %vm369_vm2, %v382_v48, 0.0 }
 0x2bc   : > { %387 = vadd.xlane.f32.xlu1 %v386_v49 }
 0x347   : > { %v385_v50 = vpop.xlane.xlu0 %384 }
 0x348   : > { %v389_v51 = vmul.f32 0.03125, %v385_v50 }
 0x349   : > { %v388_v52 = vpop.xlane.xlu1 %387 }
 0x34a   : > { %v391_v53 = vadd.f32 1e-05, %v389_v51  ;;  %v390_v54 = vmul.f32 0.03125, %v388_v52 }
 0x34c   : > { %562 = vrsqrt.f32 %v391_v53  ;;  %v392_v55 = vadd.f32 1e-05, %v390_v54 }
 0x34e   : > { %564 = vrsqrt.f32 %v392_v55 }
 0x356   : > { %v563_v56 = vpop.eup %562 }
 0x357   : > { %v395_v58 = vmul.f32 %v563_v56, %v379_v43 }
 0x358   : > { %v565_v59 = vpop.eup %564 }
 0x359   : > { %v404_v61 = vmul.f32 %v512_v57, %v395_v58  ;;  %v396_v62 = vmul.f32 %v565_v59, %v380_v45 }
 0x35b   : > { %v408_v0 = vadd.f32 %v406_v60, %v404_v61  ;;  %v405_v1 = vmul.f32 %v512_v57, %v396_v62 }
 0x35d   : > { %v414_v3 = vrot.slane %v408_v0, 7  ;;  %v409_v4 = vadd.f32 %v407_v63, %v405_v1 }
 0x35f   : > { %v420_v5 = vsel %vm413_vm3, %v410_v2, %v414_v3  ;;  %v415_v6 = vrot.slane %v409_v4, 7 }
 0x360   : > { %v519_v8 = vpack.c.bf16 %v420_v5, %v420_v5 }
 0x361   : > { %v416_v9 = vsel %vm413_vm3, %v414_v3, %v415_v6  ;;  %v521_v10 = vpack.c.bf16 %v415_v6, %v415_v6 }
 0x362   : > { %435 = vst.msk [vmem:[%s251_s26] sm:$0xf] %vm434_vm6, %v519_v8  ;;  %v520_v11 = vpack.c.bf16 %v416_v9, %v416_v9 }
 0x363   : > { %v441_v12 = vsel %vm439_vm7, %v521_v10, %v440_v7 }
 0x364   : > { %436 = vst.msk [vmem:[%s251_s26 + $0x4] sm:$0xf] %vm434_vm6, %v520_v11  ;;  %442 = vst [vmem:[%s251_s26 + $0x8] sm:$0x1] %v441_v12 }
 0x365 PF: > { %s16_s21 = sadd.s32 1, %s572_s21  }
 0x366   : > { %p13_p4 = scmp.ge.s32.totalorder %s16_s21, 4  }
 0x368   :  { %15 = sbr.rel (!%p13_p4) target bundleno = 1 (0x1), region = 74 }

</bundles_post_ra>
